<compile_context>
chip_gen: v7x
topology: tpu7x:2x2x1
jax: 0.10.0
libtpu: 0.0.40
codegen_flags: <defaults>
</compile_context>

<pallas_src>
import functools
import math

import jax
import jax.numpy as jnp
from jax import lax
from jax.experimental import pallas as pl
from jax.experimental.pallas import tpu as pltpu


# ----------------------- fused / tiled linear projection --------------------

def _linear_kernel(x_ref, w_ref, b_ref, o_ref):
    # One (projection p, row-tile i) grid step: y = x @ W + b.
    x = x_ref[0].astype(jnp.bfloat16)                       # (TM, din)
    w = w_ref[0].astype(jnp.bfloat16)                       # (din, dout)
    y = jnp.dot(x, w, preferred_element_type=jnp.float32)   # MXU, f32 accumulate
    o_ref[0] = y + b_ref[0]                                  # (TM, dout) + (1, dout)


def _fused_linear(xs, ws, bs, *, row_tile=512):
    """Batched tiled linear: xs (P, N, din) @ ws (P, din, dout) + bs (P, dout)."""
    P, N, din = xs.shape
    dout = ws.shape[2]
    tm = N if N <= row_tile else row_tile        # tm == N or tm % 8 == 0
    grid = (P, pl.cdiv(N, tm))
    cost = pl.CostEstimate(
        flops=2 * P * N * din * dout,
        transcendentals=0,
        bytes_accessed=4 * (P * N * din + P * din * dout + P * dout + P * N * dout),
    )
    return pl.pallas_call(
        _linear_kernel,
        out_shape=jax.ShapeDtypeStruct((P, N, dout), jnp.float32),
        grid=grid,
        in_specs=[
            pl.BlockSpec((1, tm, din), lambda p, i: (p, i, 0)),
            pl.BlockSpec((1, din, dout), lambda p, i: (p, 0, 0)),
            pl.BlockSpec((1, 1, dout), lambda p, i: (p, 0, 0)),
        ],
        out_specs=pl.BlockSpec((1, tm, dout), lambda p, i: (p, i, 0)),
        compiler_params=pltpu.CompilerParams(
            dimension_semantics=("parallel", "parallel"),
            vmem_limit_bytes=32 * 1024 * 1024,
        ),
        cost_estimate=cost,
    )(xs, ws, bs.reshape(P, 1, dout))


# ------------------------------ attention core -------------------------------

def _attention_kernel(q_ref, k_ref, v_ref, ctx_ref, attn_ref=None, *,
                      num_heads, scale):
    # One batch element per grid step; all heads handled together.
    Sq, dm = q_ref.shape[1], q_ref.shape[2]
    d_k = dm // num_heads

    q_full = q_ref[0].astype(jnp.bfloat16)        # (Sq, dm)
    k_full = k_ref[0].astype(jnp.bfloat16)        # (Sk, dm)
    v_full = v_ref[0].astype(jnp.bfloat16)        # (Sk, dm)

    # Head split inside VMEM (no HBM round trip): (S, dm) -> (H, S, d_k).
    q = jnp.stack([q_full[:, h * d_k:(h + 1) * d_k] for h in range(num_heads)])
    k = jnp.stack([k_full[:, h * d_k:(h + 1) * d_k] for h in range(num_heads)])
    v = jnp.stack([v_full[:, h * d_k:(h + 1) * d_k] for h in range(num_heads)])

    # Scores: contract the minor d_k dims directly (no explicit K transpose).
    score = jnp.einsum("hqd,hkd->hqk", q, k,
                       preferred_element_type=jnp.float32) * scale   # (H, Sq, Sk)

    # Numerically-stable softmax in f32; reciprocal goes to the EUP slot.
    m = jnp.max(score, axis=-1, keepdims=True)
    e = jnp.exp(score - m)
    attn = e * pl.reciprocal(jnp.sum(e, axis=-1, keepdims=True), approx=True)
    if attn_ref is not None:
        attn_ref[0] = attn

    ctx = jnp.einsum("hqk,hkd->hqd", attn.astype(jnp.bfloat16), v,
                     preferred_element_type=jnp.float32)             # (H, Sq, d_k)

    # Merge heads in VMEM and issue one lane-dense (Sq, d_model) store.
    ctx_ref[0] = jnp.concatenate([ctx[h] for h in range(num_heads)], axis=-1)


def _attention(qp, kp, vp, num_heads, *, return_attn=True):
    """qp: (B, Sq, dm), kp/vp: (B, Sk, dm)  ->  (ctx (B,Sq,dm), attn or None)."""
    B, Sq, dm = qp.shape
    Sk = kp.shape[1]
    d_k = dm // num_heads
    scale = 1.0 / math.sqrt(d_k)
    kernel = functools.partial(_attention_kernel, num_heads=num_heads, scale=scale)

    ctx_shape = jax.ShapeDtypeStruct((B, Sq, dm), jnp.float32)
    ctx_spec = pl.BlockSpec((1, Sq, dm), lambda b: (b, 0, 0))
    if return_attn:
        out_shape = (ctx_shape,
                     jax.ShapeDtypeStruct((B, num_heads, Sq, Sk), jnp.float32))
        out_specs = (ctx_spec,
                     pl.BlockSpec((1, num_heads, Sq, Sk), lambda b: (b, 0, 0, 0)))
    else:
        out_shape = ctx_shape
        out_specs = ctx_spec

    cost = pl.CostEstimate(
        flops=4 * B * num_heads * Sq * Sk * d_k,
        transcendentals=B * num_heads * Sq * Sk,
        bytes_accessed=4 * (2 * B * Sq * dm + 2 * B * Sk * dm
                            + (B * num_heads * Sq * Sk if return_attn else 0)),
    )

    out = pl.pallas_call(
        kernel,
        out_shape=out_shape,
        grid=(B,),
        in_specs=[
            pl.BlockSpec((1, Sq, dm), lambda b: (b, 0, 0)),
            pl.BlockSpec((1, Sk, dm), lambda b: (b, 0, 0)),
            pl.BlockSpec((1, Sk, dm), lambda b: (b, 0, 0)),
        ],
        out_specs=out_specs,
        compiler_params=pltpu.CompilerParams(
            dimension_semantics=("parallel",),
            vmem_limit_bytes=32 * 1024 * 1024,
        ),
        cost_estimate=cost,
    )(qp, kp, vp)

    if return_attn:
        return out[0], out[1]
    return out, None


# ------------------------------ MHA wrapper ----------------------------------

def multi_head_attention(q, k, v, params, num_heads, mask=None, *, return_attn=True):
    """Forward pass of MultiHeadAttention.

    q: (B, Sq, d_model), k/v: (B, Sk, d_model) float32.
    Returns (output (B, Sq, d_model), attention (B, H, Sq, Sk) or None).
    """
    assert mask is None  # TODO(synk): mask branch not implemented (mask=None only)
    B, Sq, dm = q.shape
    Sk = k.shape[1]

    w_qkv, b_qkv = params["w_qkv"], params["b_qkv"]   # pre-stacked, (in, out) layout

    if Sq == Sk:
        # Single fused launch for all three projections.
        xs = jnp.stack([q.reshape(B * Sq, dm),
                        k.reshape(B * Sk, dm),
                        v.reshape(B * Sk, dm)])
        proj = _fused_linear(xs, w_qkv, b_qkv)         # (3, B*S, dm)
        qp = proj[0].reshape(B, Sq, dm)
        kp = proj[1].reshape(B, Sk, dm)
        vp = proj[2].reshape(B, Sk, dm)
    else:
        # Cross-attention fallback: q alone + fused K/V.
        qp = _fused_linear(q.reshape(1, B * Sq, dm),
                           w_qkv[:1], b_qkv[:1])[0].reshape(B, Sq, dm)
        kv = _fused_linear(jnp.stack([k.reshape(B * Sk, dm),
                                      v.reshape(B * Sk, dm)]),
                           w_qkv[1:], b_qkv[1:])
        kp = kv[0].reshape(B, Sk, dm)
        vp = kv[1].reshape(B, Sk, dm)

    ctx, attn = _attention(qp, kp, vp, num_heads, return_attn=return_attn)

    out = _fused_linear(ctx.reshape(1, B * Sq, dm),
                        params["wo"][None], params["bo"][None])[0].reshape(B, Sq, dm)
    return out, attn


def init_params(key, d_model):
    """nn.Linear-style init (uniform +/- 1/sqrt(fan_in)).  Weights are stored
    pre-transposed as (in, out) and the Q/K/V weights pre-stacked so the forward
    path does no per-call .T / stacking."""
    bound = 1.0 / math.sqrt(d_model)
    keys = jax.random.split(key, 8)
    u = lambda kk, shape: jax.random.uniform(kk, shape, jnp.float32, -bound, bound)
    return {
        "w_qkv": jnp.stack([u(keys[0], (d_model, d_model)),
                            u(keys[2], (d_model, d_model)),
                            u(keys[4], (d_model, d_model))]),
        "b_qkv": jnp.stack([u(keys[1], (d_model,)),
                            u(keys[3], (d_model,)),
                            u(keys[5], (d_model,))]),
        "wo": u(keys[6], (d_model, d_model)),
        "bo": u(keys[7], (d_model,)),
    }


# --------------------------- pure-JAX reference ------------------------------

def _reference_mha(q, k, v, params, num_heads):
    B, Sq, dm = q.shape
    Sk = k.shape[1]
    d_k = dm // num_heads
    wq, wk, wv = params["w_qkv"]
    bq, bk, bv = params["b_qkv"]

    def split(x, S):
        return x.reshape(B, S, num_heads, d_k).transpose(0, 2, 1, 3)

    qh = split(q @ wq + bq, Sq)
    kh = split(k @ wk + bk, Sk)
    vh = split(v @ wv + bv, Sk)
    score = jnp.einsum("bhqd,bhkd->bhqk", qh, kh) / math.sqrt(d_k)
    attn = jax.nn.softmax(score, axis=-1)
    ctx = jnp.einsum("bhqk,bhkd->bhqd", attn, vh)
    ctx = ctx.transpose(0, 2, 1, 3).reshape(B, Sq, dm)
    out = ctx @ params["wo"] + params["bo"]
    return out, attn


if __name__ == "__main__":
    B, Sq, Sk, d_model, num_heads = 2, 8, 8, 32, 4

    root = jax.random.PRNGKey(0)
    k_in, k_par = jax.random.split(root)
    kq, kk, kv = jax.random.split(k_in, 3)
    q = jax.random.normal(kq, (B, Sq, d_model), jnp.float32)
    k = jax.random.normal(kk, (B, Sk, d_model), jnp.float32)
    v = jax.random.normal(kv, (B, Sk, d_model), jnp.float32)
    params = init_params(k_par, d_model)

    out, attn = multi_head_attention(q, k, v, params, num_heads)
    jax.block_until_ready((out, attn))

    assert out.shape == (B, Sq, d_model)
    assert attn.shape == (B, num_heads, Sq, Sk)
    # softmax rows sum to ~1 (approx reciprocal => slightly looser tolerance)
    assert jnp.allclose(jnp.sum(attn, axis=-1), 1.0, atol=1e-2)

    # compare against a pure-JAX f32 reference (bf16 MXU operands => loose tol)
    out_ref, attn_ref = _reference_mha(q, k, v, params, num_heads)
    assert jnp.allclose(out, out_ref, atol=5e-2, rtol=5e-2), \
        float(jnp.max(jnp.abs(out - out_ref)))
    assert jnp.allclose(attn, attn_ref, atol=5e-2, rtol=5e-2)

    print("KERNEL_OK")
</pallas_src>

<mosaic_0001>
module attributes {stable_mosaic.version = 11 : i64} {
  func.func @_linear_kernel(%arg0: i32, %arg1: i32, %arg2: memref<1x16x32xf32, #tpu.memory_space<vmem>>, %arg3: memref<1x32x32xf32, #tpu.memory_space<vmem>>, %arg4: memref<1x1x32xf32, #tpu.memory_space<vmem>>, %arg5: memref<1x16x32xf32, #tpu.memory_space<vmem>>) attributes {dimension_semantics = [#tpu.dimension_semantics<parallel>, #tpu.dimension_semantics<parallel>], iteration_bounds = array<i64: 3, 1>, scalar_prefetch = 0 : i64, scratch_operands = 0 : i64, tpu.core_type = #tpu.core_type<tc>, window_params = [{transform_indices = @transform_0, window_bounds = array<i64: 1, 16, 32>}, {transform_indices = @transform_1, window_bounds = array<i64: 1, 32, 32>}, {transform_indices = @transform_2, window_bounds = array<i64: 1, 1, 32>}, {transform_indices = @transform_3, window_bounds = array<i64: 1, 16, 32>}]} {
    %c0 = arith.constant 0 : index
    %c0_0 = arith.constant 0 : index
    %c0_1 = arith.constant 0 : index
    %0 = vector.load %arg2[%c0, %c0_0, %c0_1] : memref<1x16x32xf32, #tpu.memory_space<vmem>>, vector<1x16x32xf32>
    %1 = vector.shape_cast %0 : vector<1x16x32xf32> to vector<16x32xf32>
    %2 = arith.truncf %1 : vector<16x32xf32> to vector<16x32xbf16>
    %c0_2 = arith.constant 0 : index
    %c0_3 = arith.constant 0 : index
    %c0_4 = arith.constant 0 : index
    %3 = vector.load %arg3[%c0_2, %c0_3, %c0_4] : memref<1x32x32xf32, #tpu.memory_space<vmem>>, vector<1x32x32xf32>
    %4 = vector.shape_cast %3 : vector<1x32x32xf32> to vector<32x32xf32>
    %5 = arith.truncf %4 : vector<32x32xf32> to vector<32x32xbf16>
    %cst = arith.constant dense<0.000000e+00> : vector<16x32xf32>
    %6 = tpu.matmul %2, %5, %cst {dimension_numbers = #tpu.dot_dimension_numbers<[1], [0], [0], [1], [0, 0, 1, 1], [], []>} : vector<16x32xbf16>, vector<32x32xbf16>, vector<16x32xf32> -> vector<16x32xf32>
    %c0_5 = arith.constant 0 : index
    %c0_6 = arith.constant 0 : index
    %c0_7 = arith.constant 0 : index
    %7 = vector.load %arg4[%c0_5, %c0_6, %c0_7] : memref<1x1x32xf32, #tpu.memory_space<vmem>>, vector<1x1x32xf32>
    %8 = vector.shape_cast %7 : vector<1x1x32xf32> to vector<1x32xf32>
    %9 = vector.broadcast %8 : vector<1x32xf32> to vector<16x32xf32>
    %10 = arith.addf %6, %9 : vector<16x32xf32>
    %c0_8 = arith.constant 0 : index
    %c0_9 = arith.constant 0 : index
    %c0_10 = arith.constant 0 : index
    %11 = vector.load %arg5[%c0_8, %c0_9, %c0_10] : memref<1x16x32xf32, #tpu.memory_space<vmem>>, vector<1x16x32xf32>
    %12 = vector.shape_cast %11 : vector<1x16x32xf32> to vector<16x32xf32>
    %13 = vector.shape_cast %10 : vector<16x32xf32> to vector<1x16x32xf32>
    tpu.vector_store %arg5[%c0_8, %c0_9, %c0_10], %13 {strides = array<i32>} : memref<1x16x32xf32, #tpu.memory_space<vmem>>, vector<1x16x32xf32>,
    return
  }
  func.func @transform_0(%arg0: i32, %arg1: i32) -> (i32, i32, i32) {
    %c0_i32 = arith.constant 0 : i32
    %c0_i32_0 = arith.constant 0 : i32
    return %arg0, %arg1, %c0_i32 : i32, i32, i32
  }
  func.func @transform_1(%arg0: i32, %arg1: i32) -> (i32, i32, i32) {
    %c0_i32 = arith.constant 0 : i32
    %c0_i32_0 = arith.constant 0 : i32
    %c0_i32_1 = arith.constant 0 : i32
    return %arg0, %c0_i32, %c0_i32_0 : i32, i32, i32
  }
  func.func @transform_2(%arg0: i32, %arg1: i32) -> (i32, i32, i32) {
    %c0_i32 = arith.constant 0 : i32
    %c0_i32_0 = arith.constant 0 : i32
    %c0_i32_1 = arith.constant 0 : i32
    return %arg0, %c0_i32, %c0_i32_0 : i32, i32, i32
  }
  func.func @transform_3(%arg0: i32, %arg1: i32) -> (i32, i32, i32) {
    %c0_i32 = arith.constant 0 : i32
    %c0_i32_0 = arith.constant 0 : i32
    return %arg0, %arg1, %c0_i32 : i32, i32, i32
  }
}

</mosaic_0001>

<bundles_post_ra>
// kernel: tpu_custom_call.1
= control target key start
LH: loop header
LB: loop body
LE: loop exit
PB: predicated region body
PF: predicated region fallthrough
CT: control target
= control target key end

     0   :  { %8 = vsyncpa [#allocation3], 0  ;;  %s988_s0 = inlined_call_operand.hbm [shape: f32[3,16,32], index: 0, kind: input, shape index: {}]   ;;  %s989_s1 = inlined_call_operand.hbm [shape: f32[3,32,32], index: 1, kind: input, shape index: {}]   ;;  %s990_s2 = inlined_call_operand.vmem [shape: f32[3,1,32], index: 2, kind: input, shape index: {}]   ;;  %s991_s3 = inlined_call_operand.hbm [shape: f32[3,16,32], index: 3, kind: output, shape index: {}]  }
   0x1   :  { %10 = vsyncpa [#allocation3 + $0x1], 0 }
   0x2   :  { %11 = vsyncpa [#allocation6], 0 }
   0x3   :  { %13 = vsyncpa [#allocation6 + $0x1], 0 }
   0x4   :  { %14 = vsyncpa [#allocation4], 0 }
   0x5   :  { %16 = vsyncpa [#allocation4 + $0x1], 0  ;;  %s747_s12 = smov 0   ;;  %s749_s13 = smov 0  }
   0x6   :  { %s751_s14 = smov 0   ;;  %s753_s15 = smov 0  }
   0x7   :  { %s755_s16 = smov 0   ;;  %s757_s17 = smov 0  }
   0x8 LB: > { %s462_s18 = sadd.s32 4294967295, %s716_s17   ;;  %s463_s19 = sadd.s32 4294967294, %s716_s17   ;;  %s716_s17 = sphi %s757_s17, %s22_s17   ;;  %s712_s16 = sphi %s755_s16, %s1008_s16   ;;  %s708_s15 = sphi %s753_s15, %s1007_s15   ;;  %s704_s14 = sphi %s751_s14, %s1006_s14   ;;  %s700_s13 = sphi %s749_s13, %s1005_s13   ;;  %s696_s12 = sphi %s747_s12, %s1004_s12  }
   0x9   : > { %s34_s20 = sadd.s32 1, %s712_s16  ;;  %s43_s21 = sadd.s32 1, %s704_s14 }
   0xa   : > { %p36_p0 = scmp.ge.s32.totalorder %s34_s20, 3  ;;  %p50_p1 = scmp.ne.s32.totalorder %s704_s14, %s700_s13 }
   0xb   : > { %p51_p2 = scmp.eq.s32.totalorder %s716_s17, 0  ;;  %p56_p3 = scmp.ne.s32.totalorder %s700_s13, %s696_s12 }
   0xc   : > { %s1010_s20 = smov (%p36_p0, %s34_s20), 0  ;;  %p57_p5 = scmp.eq.s32.totalorder %s462_s18, 0 }
   0xd   : > { %p788_p4 = por %p51_p2, %p50_p1  ;;  %s38_s23 = ssub.s32 %s712_s16, %s1010_s20 }
   0xe   : > { %p134_p6 = scmp.eq.s32.totalorder %s462_s18, 2  ;;  %p41_p7 = scmp.eq.s32.totalorder %s38_s23, 0 }
   0xf   : > { %p794_p8 = por %p57_p5, %p56_p3  ;;  %p140_p10 = scmp.eq.s32.totalorder %s463_s19, 2 }
  0x10   : > { %p798_p9 = por %p134_p6, %p50_p1  ;;  %p514_p12 = scmp.lt.s32.totalorder %s716_s17, 3 }
  0x11   : > { %s995_s24 = scalar_select %p794_p8, 1, 0 }
  0x12   : > { %s996_s25 = scalar_select %p798_p9, 1, 0 }
  0x13   : > { %s803_s26 = scalar_select %p41_p7, %s704_s14, %s43_s21  }
  0x14   : > { %p805_p11 = por %p140_p10, %p56_p3  ;;  %s811_s28 = sand.u32 1, %s704_s14  }
  0x15   : > { %s466_s29 = sshll.u32 %s811_s28, 4  ;;  %s483_s30 = sshll.u32 %s712_s16, 8 }
  0x16   : > { %s997_s27 = scalar_select %p805_p11, 1, 0 }
  0x17   : > { %s818_s6 = scalar_lea.hbm %s988_s0, %s483_s30  ;;  %s164_s7 = scalar_lea.vmem [#allocation2], %s466_s29 }
  0x18   : > { %s173_s8 = sshll.u32 %s164_s7, 4  ;;  %p824_p13 = pnand %p514_p12, %p788_p4  ;;  %s820_s8 = int_to_ptr.vmem [resolvable:$true] %s173_s8 }
  0x19   : > { %s161_s10 = scalar_lea.sflag [#allocation3], %s811_s28  ;;  %s570_s11 = scalar_lea.hbm %s818_s6, 256 }
  0x1a   : > { %p571_p1 = scmp.ne.s32.totalorder %s818_s6, %s570_s11  ;;  %p572_p2 = pneg %p824_p13 }
  0x1b   : > { %s575_s21 = scalar_lea.hbm %s988_s0, 768  ;;  %p576_p4 = scmp.lt.u32.totalorder %s818_s6, %s988_s0 }
  0x1c   : > { %p573_p3 = pnand %p572_p2, %p571_p1  ;;  %p577_p6 = scmp.lt.u32.totalorder %s575_s21, %s570_s11 }
  0x1d   : > { %p579_p10 = scmp.lt.u32.totalorder %s570_s11, %s818_s6 }
  0x1e   : > { %p574_p5 = pneg %p573_p3  ;;  %p578_p7 = por %p577_p6, %p576_p4 }
  0x20   : > { %p580_p12 = por %p579_p10, %p578_p7 }
  0x22   : > { %p581_p0 = pnand %p580_p12, %p574_p5 }
  0x24   : > { %584 = shalt.err (!%p581_p0)
}
  0x25   : > { %s585_s29 = scalar_lea.vmem %s820_s8, 256  ;;  %s718_s30 = smov [#allocation2]  }
  0x26   : > { %p586_p1 = scmp.ne.s32.totalorder %s820_s8, %s585_s29  ;;  %s590_s4 = sshll.u32 %s718_s30, 4  ;;  %s591_s4 = int_to_ptr.vmem [resolvable:$false] %s590_s4 }
  0x27   : > { %s592_s5 = scalar_lea.vmem %s591_s4, 512  ;;  %p593_p9 = scmp.lt.s32.totalorder %s820_s8, %s591_s4 }
  0x28   : > { %p588_p3 = pnand %p586_p1, %p572_p2  ;;  %p594_p4 = scmp.lt.s32.totalorder %s592_s5, %s585_s29 }
  0x2a   : > { %p589_p11 = pneg %p588_p3  ;;  %p595_p6 = por %p594_p4, %p593_p9 }
  0x2c   : > { %p596_p7 = pnand %p595_p6, %p589_p11 }
  0x2e   : > { %599 = shalt.err (!%p596_p7)
}
  0x2f   : > { %s719_s7 = smov 128   ;;  %s720_s11 = smov 8  }
  0x30   : > { %506 = dma.hbm_to_vmem [thread:$0]  (!%p824_p13), %s818_s6, 256, %s820_s8, %s161_s10, %s719_s7, %s719_s7, %s720_s11  }
  0x31   : > { %p208_p9 = scmp.lt.s32.totalorder %s716_s17, 4  ;;  %s469_s18 = sshll.u32 %s811_s28, 5 }
  0x32   : > { %s484_s19 = sshll.u32 %s712_s16, 9  ;;  %p999_p11 = scmp.ge.s32.totalorder %s716_s17, 1 }
  0x33   : > { %s872_s29 = scalar_lea.hbm %s989_s1, %s484_s19  ;;  %s187_s30 = scalar_lea.vmem [#allocation5], %s469_s18 }
  0x34   : > { %p865_p0 = pnand %p999_p11, %p208_p9  ;;  %s194_s4 = sshll.u32 %s187_s30, 4  ;;  %s874_s4 = int_to_ptr.vmem [resolvable:$true] %s194_s4 }
  0x35   : > { %s184_s6 = scalar_lea.sflag [#allocation6], %s811_s28  ;;  %s600_s8 = scalar_lea.hbm %s872_s29, 512 }
  0x36   : > { %p601_p5 = scmp.ne.s32.totalorder %s872_s29, %s600_s8  ;;  %s605_s19 = scalar_lea.hbm %s989_s1, 1536 }
  0x37   : > { %p606_p1 = scmp.lt.u32.totalorder %s872_s29, %s989_s1  ;;  %p607_p3 = scmp.lt.u32.totalorder %s605_s19, %s600_s8 }
  0x38   : > { %p603_p10 = pnand %p601_p5, %p572_p2  ;;  %p609_p6 = scmp.lt.u32.totalorder %s600_s8, %s872_s29 }
  0x39   : > { %p608_p4 = por %p607_p3, %p606_p1 }
  0x3a   : > { %p604_p12 = pneg %p603_p10 }
  0x3b   : > { %p610_p7 = por %p609_p6, %p608_p4 }
  0x3d   : > { %p611_p9 = pnand %p610_p7, %p604_p12 }
  0x3f   : > { %614 = shalt.err (!%p611_p9)
}
  0x40   : > { %s615_s18 = scalar_lea.vmem %s874_s4, 512  ;;  %s721_s30 = smov [#allocation5]  }
  0x41   : > { %p616_p11 = scmp.ne.s32.totalorder %s874_s4, %s615_s18  ;;  %s620_s10 = sshll.u32 %s721_s30, 4  ;;  %s621_s10 = int_to_ptr.vmem [resolvable:$false] %s620_s10 }
  0x42   : > { %s622_s5 = scalar_lea.vmem %s621_s10, 1024  ;;  %p623_p8 = scmp.lt.s32.totalorder %s874_s4, %s621_s10 }
  0x43   : > { %p618_p5 = pnand %p616_p11, %p572_p2  ;;  %p624_p1 = scmp.lt.s32.totalorder %s622_s5, %s615_s18 }
  0x45   : > { %p619_p10 = pneg %p618_p5  ;;  %p625_p3 = por %p624_p1, %p623_p8 }
  0x47   : > { %p626_p4 = pnand %p625_p3, %p619_p10 }
  0x49   : > { %629 = shalt.err (!%p626_p4)
}
  0x4a   : > { %509 = dma.hbm_to_vmem [thread:$0]  (!%p824_p13), %s872_s29, 512, %s874_s4, %s184_s6, %s719_s7, %s719_s7, %s720_s11  }
  0x4b   : > { %212 = sbr.rel (%p865_p0) target bundleno = 327 (0x147), region = 32  ;;  %s908_s8 = sand.u32 (!%p865_p0), 1, %s700_s13  }
  0x4c   : > { %s473_s19 = sshll.u32 (!%p865_p0), %s908_s8, 4  ;;  %s215_s9 = scalar_lea.sflag (!%p865_p0), [#allocation3], %s908_s8 }
  0x4d   : > { %s218_s22 = scalar_lea.vmem (!%p865_p0), [#allocation2], %s473_s19  ;;  %p1001_p8 = scmp.ne.s32.totalorder (!%p865_p0), %s995_s24, 0 }
  0x52   : > { %683 = dma.done.wait (%p1001_p8), %s215_s9, 256  }
  0x53   : > { %685 = vsyncadd (%p1001_p8), %s215_s9, 4294967040  ;;  %s474_s28 = sshll.u32 %s908_s8, 5  ;;  %s224_s7 = scalar_lea.sflag [#allocation6], %s908_s8 }
  0x54   : > { %s227_s11 = scalar_lea.vmem [#allocation5], %s474_s28 }
  0x55   : > { %687 = dma.done.wait (%p1001_p8), %s224_s7, 512  }
  0x56   : > { %689 = vsyncadd (%p1001_p8), %s224_s7, 4294966784  ;;  %v722_v0 = vmov 0.0   ;;  %vm723_vm0 = vmmov 0   ;;  %v267_v1 = vld [vmem:[%s227_s11] sm:$0xff]  ;;  %v268_v2 = vld [vmem:[%s227_s11 + $0x8] sm:$0xff]  ;;  %vm280_vm1 = vcmask 261120  }
  0x57   : > { %489 = vmatprep.subr.bf16.mxu0 %v722_v0  ;;  %493 = vmatprep.mubr.msk.bf16.mxu0 %vm723_vm0, %v722_v0  ;;  %v269_v3 = vld [vmem:[%s227_s11 + $0x10] sm:$0xff]  ;;  %v271_v4 = vpack.c.bf16 %v268_v2, %v267_v1  ;;  %v270_v5 = vld [vmem:[%s227_s11 + $0x18] sm:$0xff]  ;;  %p259_p13 = scmp.lt.s32.totalorder %s708_s15, 2  ;;  %s257_s6 = scalar_lea.vmem [#allocation7], %s473_s19 }
  0x58   : > { %v272_v6 = vpack.c.bf16 %v270_v5, %v269_v3  ;;  %v264_v7 = vld [vmem:[%s218_s22] sm:$0xff]  ;;  %v265_v8 = vld [vmem:[%s218_s22 + $0x8] sm:$0xff]  ;;  %s343_s23 = sshll.u32 %s257_s6, 4  ;;  %s485_s18 = sshll.u32 %s708_s15, 8  ;;  %s933_s23 = int_to_ptr.vmem [resolvable:$true] %s343_s23 }
  0x59   : > { %490 = vmatpush3.bf16.msra.mxu0 %v271_v4  ;;  %v266_v9 = vpack.c.bf16 %v265_v8, %v264_v7  ;;  %s260_s24 = scalar_select %p259_p13, %s708_s15, 2 }
  0x5a   : > { %491 = vmatprep.subr.bf16.mxu0 %v722_v0  ;;  %s938_s5 = scalar_lea.hbm %s991_s3, %s485_s18  ;;  %s328_s15 = scalar_lea.sflag [#allocation4], %s908_s8 }
  0x5b   : > { %s261_s4 = scalar_lea.vmem %s990_s2, %s260_s24  ;;  %s630_s19 = scalar_lea.vmem %s933_s23, 256 }
  0x5c   : > { %v476_v10 = vld [vmem:[%s261_s4] ss:$0 sm:$0xff]  ;;  %p631_p2 = scmp.ne.s32.totalorder %s933_s23, %s630_s19  ;;  %p1002_p0 = scmp.ne.s32.totalorder %s996_s25, 0 }
  0x5d   : > { %492 = vmatpush3.bf16.msra.mxu0 %v272_v6  ;;  %s724_s9 = smov [#allocation7]  }
  0x5e   : > { %p632_p12 = pnand %p631_p2, %p1002_p0  ;;  %s634_s22 = sshll.u32 %s724_s9, 4  ;;  %s635_s22 = int_to_ptr.vmem [resolvable:$false] %s634_s22 }
  0x5f   : > { %s636_s28 = scalar_lea.vmem %s635_s22, 512  ;;  %p637_p7 = scmp.lt.s32.totalorder %s933_s23, %s635_s22 }
  0x60   : > { %494 = vmatmul.mubr.msk.bf16.vlgmr.msra.gmra.mrb[0].mxu0 %vm280_vm1, %v266_v9  ;;  %p633_p6 = pneg %p632_p12  ;;  %p638_p9 = scmp.lt.s32.totalorder %s636_s28, %s630_s19 }
  0x62   : > { %p639_p11 = por %p638_p9, %p637_p7 }
  0x64   : > { %p640_p5 = pnand %p639_p11, %p633_p6 }
 0x133   : > { %v318_v11 = vpop.f32.mrb[0].mxu0 }
 0x134   : > { %v319_v12 = vadd.f32 %v476_v10, %v318_v11  ;;  %v495_v13 = vpop.f32.mrb[1].mxu0 }
 0x135   : > { %v321_v14 = vpop.f32.mrb[2].mxu0 }
 0x136   : > { %325 = vst.msk [vmem:[%s257_s6] sm:$0xff] %vm280_vm1, %v319_v12  ;;  %v322_v15 = vadd.f32 %v476_v10, %v321_v14  ;;  %v496_v16 = vpop.f32.mrb[3].mxu0 }
 0x138   : > { %326 = vst.msk [vmem:[%s257_s6 + $0x8] sm:$0xff] %vm280_vm1, %v322_v15 }
 0x139   : > { %643 = shalt.err (!%p640_p5)
}
 0x13a   : > { %s644_s7 = scalar_lea.hbm %s938_s5, 256  ;;  %s648_s21 = scalar_lea.hbm %s991_s3, 768 }
 0x13b   : > { %p645_p10 = scmp.ne.s32.totalorder %s938_s5, %s644_s7  ;;  %p649_p4 = scmp.lt.u32.totalorder %s938_s5, %s991_s3 }
 0x13c   : > { %p650_p8 = scmp.lt.u32.totalorder %s648_s21, %s644_s7  ;;  %p652_p2 = scmp.lt.u32.totalorder %s644_s7, %s938_s5 }
 0x13d   : > { %p646_p1 = pnand %p645_p10, %p1002_p0 }
 0x13e   : > { %p651_p13 = por %p650_p8, %p649_p4 }
 0x13f   : > { %p647_p3 = pneg %p646_p1 }
 0x140   : > { %p653_p12 = por %p652_p2, %p651_p13 }
 0x142   : > { %p654_p6 = pnand %p653_p12, %p647_p3 }
 0x144   : > { %657 = shalt.err (!%p654_p6)
}
 0x145   : > { %s725_s6 = smov 128   ;;  %s726_s18 = smov 8  }
 0x146   : > { %501 = dma.vmem_to_hbm [thread:$0]  (%p1002_p0), %s933_s23, 256, %s938_s5, %s328_s15, %s725_s6, %s725_s6, %s726_s18  }
 0x147 PF: > { %p515_p7 = scmp.ge.s32.totalorder %s716_s17, 2  ;;  %s358_s30 = sand.u32 1, %s696_s12  }
 0x148   : > { %p1003_p9 = scmp.ne.s32.totalorder %s997_s27, 0  ;;  %s359_s10 = scalar_lea.sflag [#allocation4], %s358_s30 }
 0x14a   : > { %p511_p11 = pnand %p515_p7, %p1003_p9 }
 0x14c   : > { %691 = dma.done.wait (!%p511_p11), %s359_s10, 256  }
 0x14d   : > { %693 = vsyncadd (!%p511_p11), %s359_s10, 4294967040  ;;  %s22_s17 = sadd.s32 1, %s716_s17   ;;  %s1004_s12 = smov %s700_s13 }
 0x14e   : > { %p19_p5 = scmp.ge.s32.totalorder %s22_s17, 5   ;;  %s1005_s13 = smov %s704_s14 }
 0x14f   : > { %s1006_s14 = smov %s803_s26  ;;  %s1007_s15 = smov %s712_s16 }
 0x150   : > { %s1008_s16 = smov %s1010_s20  ;;  %21 = sbr.rel (!%p19_p5) target bundleno = 8 (0x8), region = 93 }
 0x157   :  { %364 = vsyncpa [#allocation3], 1 }
 0x158   :  { %366 = vsyncpa [#allocation3 + $0x1], 1 }
 0x159   :  { %367 = vsyncpa [#allocation6], 1 }
 0x15a   :  { %369 = vsyncpa [#allocation6 + $0x1], 1 }
 0x15b   :  { %370 = vsyncpa [#allocation4], 1 }
 0x15c   :  { %372 = vsyncpa [#allocation4 + $0x1], 1 }

</bundles_post_ra>
